<compile_context>
chip_gen: v5e
topology: v5e:2x2
jax: 0.10.0
libtpu: 0.0.40
codegen_flags: <defaults>
</compile_context>

<pallas_src>
import functools

import jax
import jax.numpy as jnp
from jax import lax
from jax.experimental import pallas as pl
from jax.experimental.pallas import tpu as pltpu


# ---------------------------------------------------------------------------
# Helpers
# ---------------------------------------------------------------------------

def _round_up(v, m):
    return (v + m - 1) // m * m


_VMEM_BUDGET_CACHE = [None]


def _vmem_budget_bytes():
    """Per-generation VMEM budget (and vmem_limit_bytes) with headroom."""
    if _VMEM_BUDGET_CACHE[0] is None:
        try:
            cap = int(pltpu.get_tpu_info().vmem_capacity_bytes)
        except Exception:
            cap = 64 * 1024 * 1024  # conservative (v7x-sized) fallback
        cap = max(cap, 32 * 1024 * 1024)
        _VMEM_BUDGET_CACHE[0] = min((cap * 3) // 4, 96 * 1024 * 1024)
    return _VMEM_BUDGET_CACHE[0]


def _mult128_divisors_desc(v, cap):
    """All multiples of 128 that divide v (itself a multiple of 128), <= cap."""
    q = v // 128
    out = [128 * m for m in range(1, q + 1) if q % m == 0 and 128 * m <= cap]
    return sorted(out, reverse=True) if out else [128]


_TM_CANDIDATES = (1024, 512, 256, 128, 64, 32, 16, 8)
_TK_CAP = 4096   # K depth per grid step (exact divisors of padded K)
_TN_CAP = 512    # keeps Np//tn >= 2 for N>=513 -> both v7x cores get work


def _pick_tiles(Bp, Kp, Np, itembytes, budget):
    """Largest (tm, tk, tn) tiles that divide the problem and fit the budget."""
    tn = _mult128_divisors_desc(Np, _TN_CAP)[0]
    tk_cands = _mult128_divisors_desc(Kp, _TK_CAP)
    tm_cands = [c for c in _TM_CANDIDATES if Bp % c == 0] or [8]

    def vmem_use(tm, tk):
        return (2 * tm * tk * itembytes      # x tiles (double-buffered)
                + 2 * tk * tn * itembytes    # W tiles (double-buffered)
                + 2 * 1 * tn * 4             # bias tiles
                + 2 * tm * tn * 4)           # resident f32 output tile

    for tm in tm_cands:
        for tk in tk_cands:
            if vmem_use(tm, tk) <= budget:
                return tm, tk, tn
    return tm_cands[-1], tk_cands[-1], tn


# ---------------------------------------------------------------------------
# Kernels
# ---------------------------------------------------------------------------

def _linear_single_block_kernel(x_ref, w_ref, b_ref, o_ref):
    """Whole problem in one VMEM block: y = x @ W_kn + b, W stored (K, N)."""
    y = lax.dot_general(
        x_ref[...], w_ref[...],
        dimension_numbers=(((1,), (0,)), ((), ())),
        preferred_element_type=jnp.float32,
    )
    o_ref[...] = (y + b_ref[...]).astype(o_ref.dtype)


def _linear_tiled_kernel(x_ref, w_ref, b_ref, o_ref):
    """(tm, tn) output tile accumulated in place over the innermost K axis."""
    k = pl.program_id(2)

    @pl.when(k == 0)
    def _():
        # Output block index (i, j) is constant across k, so o_ref (f32) stays
        # VMEM-resident: seed it with the broadcast bias, then accumulate.
        o_ref[...] = jnp.zeros_like(o_ref) + b_ref[...]

    # x: (tm, tk), W: (tk, tn) -> MXU-native NN matmul, lane axis = output N.
    o_ref[...] += lax.dot_general(
        x_ref[...], w_ref[...],
        dimension_numbers=(((1,), (0,)), ((), ())),
        preferred_element_type=jnp.float32,
    )


# ---------------------------------------------------------------------------
# Forward
# ---------------------------------------------------------------------------

@functools.partial(jax.jit, static_argnames=("n_orig", "force_tiled"))
def _reglog_forward(x_nchw, w_kn, b_row, *, n_orig, force_tiled=False):
    """y = x.view(B, C*H*W) @ W^T + b with W pre-stored as padded (Kp, Np)."""
    B = x_nchw.shape[0]
    K = x_nchw.shape[1] * x_nchw.shape[2] * x_nchw.shape[3]
    Kp, Np = w_kn.shape
    cdt = w_kn.dtype
    itembytes = jnp.dtype(cdt).itemsize

    x2d = x_nchw.reshape(B, K).astype(cdt)          # == torch x.view(...)
    if Kp != K:                                      # only when K % 128 != 0
        x2d = jnp.pad(x2d, ((0, 0), (0, Kp - K)))

    budget = _vmem_budget_bytes()
    fast_bytes = min(budget // 2, 32 * 1024 * 1024)
    total_bytes = itembytes * (B * Kp + Kp * Np) + 4 * Np + 4 * B * Np

    if (not force_tiled) and total_bytes <= fast_bytes:
        # Gridless fast path: one DMA per operand, one matmul, no grid steps.
        out_p = pl.pallas_call(
            _linear_single_block_kernel,
            out_shape=jax.ShapeDtypeStruct((B, Np), jnp.float32),
            in_specs=[pl.BlockSpec(memory_space=pltpu.MemorySpace.VMEM)] * 3,
            out_specs=pl.BlockSpec(memory_space=pltpu.MemorySpace.VMEM),
            compiler_params=pltpu.CompilerParams(vmem_limit_bytes=budget),
        )(x2d, w_kn, b_row)
        return out_p if Np == n_orig else out_p[:, :n_orig]

    # ---- Tiled path --------------------------------------------------------
    Bp = _round_up(B, 8)
    if Bp != B:
        x2d = jnp.pad(x2d, ((0, Bp - B), (0, 0)))

    tm, tk, tn = _pick_tiles(Bp, Kp, Np, itembytes, budget)
    grid = (Bp // tm, Np // tn, Kp // tk)

    out_p = pl.pallas_call(
        _linear_tiled_kernel,
        out_shape=jax.ShapeDtypeStruct((Bp, Np), jnp.float32),
        grid_spec=pltpu.PrefetchScalarGridSpec(
            num_scalar_prefetch=0,
            grid=grid,
            in_specs=[
                pl.BlockSpec((tm, tk), lambda i, j, k: (i, k)),   # x tile
                pl.BlockSpec((tk, tn), lambda i, j, k: (k, j)),   # W tile (K,N)
                pl.BlockSpec((1, tn), lambda i, j, k: (0, j)),    # bias tile
            ],
            out_specs=pl.BlockSpec((tm, tn), lambda i, j, k: (i, j)),
        ),
        compiler_params=pltpu.CompilerParams(
            dimension_semantics=("parallel", "parallel", "arbitrary"),
            vmem_limit_bytes=budget,
        ),
    )(x2d, w_kn, b_row)
    # Note: if the W-tile DMA ever becomes exposed, pipeline_mode=pl.Buffered(3)
    # on the W BlockSpec is a cheap knob to try.

    if (Bp, Np) == (B, n_orig):
        return out_p
    return out_p[:B, :n_orig]


class RegLog:
    """Logistic regression head on frozen (B, C, H, W) features.

    Matches torch: x.view(B, C*H*W) @ weight.T + bias, with weight (N, K).
    Parameter layout work (transpose to (K, N), pad K/N to multiples of 128,
    optional bf16 cast) is done once here, never in the per-call forward.
    """

    def __init__(self, weight, bias, *, compute_dtype=jnp.float32):
        weight = jnp.asarray(weight, jnp.float32)
        bias = jnp.asarray(bias, jnp.float32)
        N, K = weight.shape
        Np = _round_up(N, 128)
        Kp = _round_up(K, 128)

        w_kn = weight.T                                   # (K, N), one-time
        if (Kp, Np) != (K, N):
            w_kn = jnp.pad(w_kn, ((0, Kp - K), (0, Np - N)))
        self.w_kn = jax.device_put(w_kn.astype(compute_dtype))

        b_row = bias.reshape(1, N)
        if Np != N:
            b_row = jnp.pad(b_row, ((0, 0), (0, Np - N)))
        self.b_row = jax.device_put(b_row)

        self.num_labels = N
        self.in_features = K

    def __call__(self, x_nchw, *, force_tiled=False):
        return _reglog_forward(x_nchw, self.w_kn, self.b_row,
                               n_orig=self.num_labels, force_tiled=force_tiled)


# ---------------------------------------------------------------------------
# Demo / self-test
# ---------------------------------------------------------------------------

if __name__ == "__main__":
    key = jax.random.PRNGKey(0)
    kx, kw, kb, kx2, kw2, kb2 = jax.random.split(key, 6)

    # --- Small demo shape (module semantics scaled down): B=2, C=4, 7x7 -----
    B, C, H, W = 2, 4, 7, 7
    num_labels = 10
    K = C * H * W

    x = jax.random.normal(kx, (B, C, H, W), dtype=jnp.float32)
    bound = 1.0 / (K ** 0.5)
    weight = jax.random.uniform(kw, (num_labels, K), jnp.float32, -bound, bound)
    bias = jax.random.uniform(kb, (num_labels,), jnp.float32, -bound, bound)

    model = RegLog(weight, bias)                      # f32 params, prepped once
    out = model(x)                                    # gridless fast path
    jax.block_until_ready(out)
    ref = jnp.dot(x.reshape(B, K), weight.T,
                  precision=lax.Precision.HIGHEST) + bias
    assert out.shape == (B, num_labels)
    assert jnp.allclose(out, ref, atol=1e-5, rtol=1e-5)

    # --- Tiled path: K accumulation (2 k-steps), N tiling (j=2), slicing ----
    B2, C2, H2, W2 = 16, 32, 16, 16                   # K2 = 8192
    num_labels2 = 1000
    K2 = C2 * H2 * W2
    x2 = jax.random.normal(kx2, (B2, C2, H2, W2), dtype=jnp.float32)
    bound2 = 1.0 / (K2 ** 0.5)
    weight2 = jax.random.uniform(kw2, (num_labels2, K2), jnp.float32, -bound2, bound2)
    bias2 = jax.random.uniform(kb2, (num_labels2,), jnp.float32, -bound2, bound2)
    ref2 = jnp.dot(x2.reshape(B2, K2), weight2.T,
                   precision=lax.Precision.HIGHEST) + bias2

    model2 = RegLog(weight2, bias2)                   # f32 compute
    out2 = model2(x2, force_tiled=True)
    jax.block_until_ready(out2)
    assert out2.shape == (B2, num_labels2)
    assert jnp.allclose(out2, ref2, atol=1e-3, rtol=1e-3)

    # --- bf16 MXU-input option (f32 accumulation), looser tolerance ---------
    model3 = RegLog(weight2, bias2, compute_dtype=jnp.bfloat16)
    out3 = model3(x2, force_tiled=True)
    jax.block_until_ready(out3)
    assert out3.shape == (B2, num_labels2)
    assert jnp.allclose(out3, ref2, atol=5e-2, rtol=5e-2)

    print("KERNEL_OK")
</pallas_src>

<mosaic_0001>
module attributes {stable_mosaic.version = 11 : i64} {
  func.func @_linear_single_block_kernel(%arg0: memref<2x256xf32, #tpu.memory_space<vmem>>, %arg1: memref<256x128xf32, #tpu.memory_space<vmem>>, %arg2: memref<1x128xf32, #tpu.memory_space<vmem>>, %arg3: memref<2x128xf32, #tpu.memory_space<vmem>>) attributes {dimension_semantics = [], scalar_prefetch = 0 : i64, scratch_operands = 0 : i64, tpu.core_type = #tpu.core_type<tc>} {
    %c0 = arith.constant 0 : index
    %c0_0 = arith.constant 0 : index
    %0 = vector.load %arg0[%c0, %c0_0] : memref<2x256xf32, #tpu.memory_space<vmem>>, vector<2x256xf32>
    %c0_1 = arith.constant 0 : index
    %c0_2 = arith.constant 0 : index
    %1 = vector.load %arg1[%c0_1, %c0_2] : memref<256x128xf32, #tpu.memory_space<vmem>>, vector<256x128xf32>
    %cst = arith.constant dense<0.000000e+00> : vector<2x128xf32>
    %2 = tpu.matmul %0, %1, %cst {dimension_numbers = #tpu.dot_dimension_numbers<[1], [0], [0], [1], [0, 0, 1, 1], [], []>} : vector<2x256xf32>, vector<256x128xf32>, vector<2x128xf32> -> vector<2x128xf32>
    %c0_3 = arith.constant 0 : index
    %c0_4 = arith.constant 0 : index
    %3 = vector.load %arg2[%c0_3, %c0_4] : memref<1x128xf32, #tpu.memory_space<vmem>>, vector<1x128xf32>
    %4 = vector.broadcast %3 : vector<1x128xf32> to vector<2x128xf32>
    %5 = arith.addf %2, %4 : vector<2x128xf32>
    %c0_5 = arith.constant 0 : index
    %c0_6 = arith.constant 0 : index
    %6 = vector.load %arg3[%c0_5, %c0_6] : memref<2x128xf32, #tpu.memory_space<vmem>>, vector<2x128xf32>
    tpu.vector_store %arg3[%c0_5, %c0_6], %5 {strides = array<i32>} : memref<2x128xf32, #tpu.memory_space<vmem>>, vector<2x128xf32>,
    return
  }
}

</mosaic_0001>

<bundles_post_ra>
// kernel: _reglog_forward.1
= control target key start
LH: loop header
LB: loop body
LE: loop exit
PB: predicated region body
PF: predicated region fallthrough
CT: control target
= control target key end

     0   :  { %8 = vsyncpa [#allocation3], 0  ;;  %s225_s0 = inlined_call_operand.vmem [shape: f32[2,256], index: 0, kind: input, shape index: {}]   ;;  %s226_s1 = inlined_call_operand.hbm [shape: f32[256,128], index: 1, kind: input, shape index: {}]   ;;  %s227_s2 = inlined_call_operand.vmem [shape: f32[1,128], index: 2, kind: input, shape index: {}]   ;;  %s228_s3 = inlined_call_operand.hbm [shape: f32[2,128], index: 3, kind: output, shape index: {}]  }
   0x1   :  { %9 = vsyncpa [#allocation4], 0  ;;  %s16_s14 = sshll.u32 %s226_s1, 4  ;;  %s189_s15 = smov [#allocation2]   ;;  %s17_s14 = int_to_ptr.hbm [resolvable:$true] %s16_s14 }
   0x2   :  { %s18_s16 = sshll.u32 %s189_s15, 4  ;;  %s190_s17 = smov 128   ;;  %s19_s16 = int_to_ptr.vmem [resolvable:$true] %s18_s16 }
   0x3   :  { %s191_s18 = smov 8  }
   0x4   :  { %24 = dma.hbm_to_vmem [thread:$0]  %s17_s14, 4096, %s19_s16, [#allocation3], %s190_s17, %s190_s17, %s191_s18  }
   0x5   :  { %185 = dma.done.wait [#allocation3], 4096  }
   0x6   :  { %186 = vsyncadd [#allocation3], 4294963200  ;;  %v47_v0 = vld [vmem:[#allocation2 + $0x78] sm:$0xff]  ;;  %v46_v1 = vld [vmem:[#allocation2 + $0x70] sm:$0xff]  ;;  %s192_s21 = smov [#allocation5]   ;;  %s122_s25 = sshll.u32 %s228_s3, 4  ;;  %s123_s25 = int_to_ptr.hbm [resolvable:$true] %s122_s25 }
   0x7   :  { %v63_v2 = vld [vmem:[#allocation2 + $0xf8] sm:$0xff]  ;;  %74 = vmatpush.msra.mxu0 %v47_v0  ;;  %v62_v3 = vld [vmem:[#allocation2 + $0xf0] sm:$0xff]  ;;  %v45_v4 = vld [vmem:[#allocation2 + $0x68] sm:$0xff]  ;;  %s120_s22 = sshll.u32 %s192_s21, 4  ;;  %s121_s22 = int_to_ptr.vmem [resolvable:$true] %s120_s22 }
   0x8   :  { %94 = vmatpush.msra.mxu1 %v63_v2  ;;  %v61_v5 = vld [vmem:[#allocation2 + $0xe8] sm:$0xff]  ;;  %v44_v6 = vld [vmem:[#allocation2 + $0x60] sm:$0xff]  ;;  %v43_v8 = vld [vmem:[#allocation2 + $0x58] sm:$0xff] }
   0x9   :  { %75 = vmatpush.msra.mxu0 %v46_v1  ;;  %v60_v7 = vld [vmem:[#allocation2 + $0xe0] sm:$0xff]  ;;  %v59_v9 = vld [vmem:[#allocation2 + $0xd8] sm:$0xff]  ;;  %v42_v10 = vld [vmem:[#allocation2 + $0x50] sm:$0xff] }
   0xa   :  { %95 = vmatpush.msra.mxu1 %v62_v3  ;;  %v58_v11 = vld [vmem:[#allocation2 + $0xd0] sm:$0xff]  ;;  %v41_v12 = vld [vmem:[#allocation2 + $0x48] sm:$0xff]  ;;  %v31_v14 = vld [vmem:[%s225_s0] sm:$0xf] }
   0xb   :  { %76 = vmatpush.msra.mxu0 %v45_v4  ;;  %v57_v13 = vld [vmem:[#allocation2 + $0xc8] sm:$0xff]  ;;  %69 = vst [vmem:[#allocation1] ss:$4 sm:$0xff] %v31_v14  ;;  %v40_v15 = vld [vmem:[#allocation2 + $0x40] sm:$0xff]  ;;  %v39_v17 = vld [vmem:[#allocation2 + $0x38] sm:$0xff] }
   0xc   :  { %96 = vmatpush.msra.mxu1 %v61_v5  ;;  %v56_v16 = vld [vmem:[#allocation2 + $0xc0] sm:$0xff]  ;;  %v55_v18 = vld [vmem:[#allocation2 + $0xb8] sm:$0xff]  ;;  %v38_v19 = vld [vmem:[#allocation2 + $0x30] sm:$0xff] }
   0xd   :  { %77 = vmatpush.msra.mxu0 %v44_v6  ;;  %v54_v20 = vld [vmem:[#allocation2 + $0xb0] sm:$0xff]  ;;  %v37_v21 = vld [vmem:[#allocation2 + $0x28] sm:$0xff]  ;;  %v36_v23 = vld [vmem:[#allocation2 + $0x20] sm:$0xff] }
   0xe   :  { %97 = vmatpush.msra.mxu1 %v60_v7  ;;  %v53_v22 = vld [vmem:[#allocation2 + $0xa8] sm:$0xff]  ;;  %v52_v24 = vld [vmem:[#allocation2 + $0xa0] sm:$0xff]  ;;  %v35_v25 = vld [vmem:[#allocation2 + $0x18] sm:$0xff] }
   0xf   :  { %78 = vmatpush.msra.mxu0 %v43_v8  ;;  %v51_v26 = vld [vmem:[#allocation2 + $0x98] sm:$0xff]  ;;  %v34_v27 = vld [vmem:[#allocation2 + $0x10] sm:$0xff]  ;;  %v33_v29 = vld [vmem:[#allocation2 + $0x8] sm:$0xff] }
  0x10   :  { %98 = vmatpush.msra.mxu1 %v59_v9  ;;  %v50_v28 = vld [vmem:[#allocation2 + $0x90] sm:$0xff]  ;;  %v49_v30 = vld [vmem:[#allocation2 + $0x88] sm:$0xff]  ;;  %v32_v31 = vld [vmem:[#allocation2] sm:$0xff] }
  0x11   :  { %79 = vmatpush.msra.mxu0 %v42_v10  ;;  %v48_v32 = vld [vmem:[#allocation2 + $0x80] sm:$0xff]  ;;  %v136_v35 = vld [vmem:[%s227_s2] ss:$0 sm:$0xff] }
  0x12   :  { %99 = vmatpush.msra.mxu1 %v58_v11  ;;  %v70_v33 = vld.sshfl [vmem:[#allocation1] sm:$0xff pattern:$0x73625140]  ;;  %v71_v34 = vld.sshfl [vmem:[#allocation1 + $0x8] sm:$0xff pattern:$0x73625140] }
  0x13   :  { %80 = vmatpush.msra.mxu0 %v41_v12 }
  0x14   :  { %100 = vmatpush.msra.mxu1 %v57_v13 }
  0x15   :  { %81 = vmatpush.msra.mxu0 %v40_v15 }
  0x16   :  { %101 = vmatpush.msra.mxu1 %v56_v16 }
  0x17   :  { %82 = vmatpush.msra.mxu0 %v39_v17 }
  0x18   :  { %102 = vmatpush.msra.mxu1 %v55_v18 }
  0x19   :  { %83 = vmatpush.msra.mxu0 %v38_v19 }
  0x1a   :  { %103 = vmatpush.msra.mxu1 %v54_v20 }
  0x1b   :  { %84 = vmatpush.msra.mxu0 %v37_v21 }
  0x1c   :  { %104 = vmatpush.msra.mxu1 %v53_v22 }
  0x1d   :  { %85 = vmatpush.msra.mxu0 %v36_v23 }
  0x1e   :  { %105 = vmatpush.msra.mxu1 %v52_v24 }
  0x1f   :  { %86 = vmatpush.msra.mxu0 %v35_v25 }
  0x20   :  { %106 = vmatpush.msra.mxu1 %v51_v26 }
  0x21   :  { %87 = vmatpush.msra.mxu0 %v34_v27 }
  0x22   :  { %107 = vmatpush.msra.mxu1 %v50_v28 }
  0x23   :  { %88 = vmatpush.msra.mxu0 %v33_v29 }
  0x24   :  { %108 = vmatpush.msra.mxu1 %v49_v30 }
  0x25   :  { %89 = vmatpush.msra.mxu0 %v32_v31 }
  0x26   :  { %109 = vmatpush.msra.mxu1 %v48_v32  ;;  %90 = vmatmul.f32.vlgmr.msra.gmra.mxu0 %v70_v33 }
  0x27   :  { %110 = vmatmul.f32.vlgmr.msra.gmra.mxu1 %v71_v34 }
  0xa3   :  { %v91_v36 = vpop.f32.mrf.mxu0 }
  0xa4   :  { %v111_v37 = vpop.f32.mrf.mxu1  ;;  %v92_v38 = vadd.f32 %v136_v35, %v91_v36 }
  0xa6   :  { %v112_v39 = vadd.f32 %v111_v37, %v92_v38 }
  0xa8   :  { %114 = vst [vmem:[#allocation5] sm:$0x3] %v112_v39 }
  0xa9   :  { %125 = dma.vmem_to_hbm [thread:$0]  %s121_s22, 32, %s123_s25, [#allocation4]  }
  0xaa   :  { %187 = dma.done.wait [#allocation4], 32  }
  0xab   :  { %188 = vsyncadd [#allocation4], 4294967264 }
  0xac   :  { %130 = vsyncpa [#allocation3], 1 }
  0xad   :  { %131 = vsyncpa [#allocation4], 1 }

</bundles_post_ra>
